<compile_context>
chip_gen: v5e
topology: v5e:2x2
jax: 0.10.0
libtpu: 0.0.40
codegen_flags: <defaults>
</compile_context>

<pallas_src>
import math

import jax
import jax.numpy as jnp
from jax.experimental import pallas as pl
from jax.experimental.pallas import tpu as pltpu


def _pick_tile(dim, candidates):
    """Largest candidate tile that evenly divides `dim`, else the full dim."""
    for c in candidates:
        if dim >= c and dim % c == 0:
            return c
    return dim


# ---------------------------------------------------------------------------
# Kernel 1: tiled dense linear  y = x @ W^T + b  (PyTorch nn.Linear semantics)
# ---------------------------------------------------------------------------
def linear_kernel(x_ref, w_ref, b_ref, o_ref, acc_ref):
    k = pl.program_id(2)

    @pl.when(k == 0)
    def _():
        acc_ref[...] = jnp.zeros_like(acc_ref)

    # x: (tm, tk) bf16, w: (tn, tk) bf16 — contract last dims (no .T needed),
    # accumulate in f32 on the MXU.
    acc_ref[...] += jax.lax.dot_general(
        x_ref[...],
        w_ref[...],
        dimension_numbers=(((1,), (1,)), ((), ())),
        preferred_element_type=jnp.float32,
    )

    @pl.when(k == pl.num_programs(2) - 1)
    def _():
        o_ref[...] = (acc_ref[...] + b_ref[...]).astype(o_ref.dtype)


def pallas_linear(x2d, w, b, out_dtype=None):
    m, kd = x2d.shape
    n = w.shape[0]
    out_dtype = out_dtype or x2d.dtype
    tm = _pick_tile(m, (512, 256, 128))
    tn = _pick_tile(n, (512, 256, 128))
    tk = _pick_tile(kd, (512, 256, 128))
    grid = (m // tm, n // tn, kd // tk)
    return pl.pallas_call(
        linear_kernel,
        out_shape=jax.ShapeDtypeStruct((m, n), out_dtype),
        grid_spec=pltpu.PrefetchScalarGridSpec(
            num_scalar_prefetch=0,
            grid=grid,
            in_specs=[
                pl.BlockSpec((tm, tk), lambda i, j, k: (i, k)),
                pl.BlockSpec((tn, tk), lambda i, j, k: (j, k)),
                pl.BlockSpec((1, tn), lambda i, j, k: (0, j)),
            ],
            out_specs=pl.BlockSpec((tm, tn), lambda i, j, k: (i, j)),
            scratch_shapes=[pltpu.VMEM((tm, tn), jnp.float32)],
        ),
        compiler_params=pltpu.CompilerParams(
            dimension_semantics=("parallel", "parallel", "arbitrary")
        ),
    )(x2d, w, b.reshape(1, n))


# ---------------------------------------------------------------------------
# Kernel 1b: fused QKV projection — one x read from HBM per grid step, reused
#            for three bf16 MXU dots with three separate f32 accumulators.
# ---------------------------------------------------------------------------
def qkv_linear_kernel(x_ref, wq_ref, wk_ref, wv_ref, bq_ref, bk_ref, bv_ref,
                      oq_ref, ok_ref, ov_ref, accq, acck, accv):
    k = pl.program_id(2)

    @pl.when(k == 0)
    def _():
        accq[...] = jnp.zeros_like(accq)
        acck[...] = jnp.zeros_like(acck)
        accv[...] = jnp.zeros_like(accv)

    x = x_ref[...]  # (tm, tk) bf16, reused three times from VMEM
    dn = (((1,), (1,)), ((), ()))
    accq[...] += jax.lax.dot_general(x, wq_ref[...], dimension_numbers=dn,
                                     preferred_element_type=jnp.float32)
    acck[...] += jax.lax.dot_general(x, wk_ref[...], dimension_numbers=dn,
                                     preferred_element_type=jnp.float32)
    accv[...] += jax.lax.dot_general(x, wv_ref[...], dimension_numbers=dn,
                                     preferred_element_type=jnp.float32)

    @pl.when(k == pl.num_programs(2) - 1)
    def _():
        oq_ref[...] = (accq[...] + bq_ref[...]).astype(oq_ref.dtype)
        ok_ref[...] = (acck[...] + bk_ref[...]).astype(ok_ref.dtype)
        ov_ref[...] = (accv[...] + bv_ref[...]).astype(ov_ref.dtype)


def pallas_qkv_linear(x2d, wq, wk, wv, bq, bk, bv, out_dtype):
    m, kd = x2d.shape
    n = wq.shape[0]
    tm = _pick_tile(m, (512, 256, 128))
    tn = _pick_tile(n, (256, 128))   # 3 weight streams + 3 accs: keep tn modest
    tk = _pick_tile(kd, (512, 256, 128))
    grid = (m // tm, n // tn, kd // tk)
    w_spec = pl.BlockSpec((tn, tk), lambda i, j, k: (j, k))
    b_spec = pl.BlockSpec((1, tn), lambda i, j, k: (0, j))
    o_spec = pl.BlockSpec((tm, tn), lambda i, j, k: (i, j))
    return pl.pallas_call(
        qkv_linear_kernel,
        out_shape=tuple(jax.ShapeDtypeStruct((m, n), out_dtype) for _ in range(3)),
        grid_spec=pltpu.PrefetchScalarGridSpec(
            num_scalar_prefetch=0,
            grid=grid,
            in_specs=[
                pl.BlockSpec((tm, tk), lambda i, j, k: (i, k)),   # x
                w_spec, w_spec, w_spec,
                b_spec, b_spec, b_spec,
            ],
            out_specs=[o_spec, o_spec, o_spec],
            scratch_shapes=[pltpu.VMEM((tm, tn), jnp.float32)] * 3,
        ),
        compiler_params=pltpu.CompilerParams(
            dimension_semantics=("parallel", "parallel", "arbitrary")
        ),
    )(x2d, wq, wk, wv, bq.reshape(1, n), bk.reshape(1, n), bv.reshape(1, n))


# ---------------------------------------------------------------------------
# Kernel 2: flash-style multi-head attention, all heads per grid step,
#           lane-dense [B, S, D] output, int8 mask streamed as (tq, tkv)
#           tiles, fully-masked tiles skipped via prefetched SMEM flags.
# ---------------------------------------------------------------------------
def _make_attention_kernel(num_heads, dk, scale, nq, nk):
    def attention_kernel(flags_ref, q_ref, k_ref, v_ref, mask_ref, o_ref,
                         m_scratch, l_scratch, acc_scratch):
        b = pl.program_id(0)
        qi = pl.program_id(1)
        ki = pl.program_id(2)

        @pl.when(ki == 0)
        def _():
            m_scratch[...] = jnp.full_like(m_scratch, -jnp.inf)
            l_scratch[...] = jnp.zeros_like(l_scratch)
            acc_scratch[...] = jnp.zeros_like(acc_scratch)

        active = flags_ref[b * (nq * nk) + qi * nk + ki]

        @pl.when(active != 0)
        def _():
            # Hoisted per-grid-step invariants (computed once, not per head):
            # pre-scaled q tile (bf16 for the MXU) and additive mask bias.
            qt = (q_ref[0].astype(jnp.float32) * jnp.float32(scale)
                  ).astype(jnp.bfloat16)                       # (tq, D)
            kt = k_ref[0]                                       # (tkv, D) bf16
            vt = v_ref[0]                                       # (tkv, D) bf16
            msk = mask_ref[0, 0].astype(jnp.int32)              # (tq, tkv)
            bias = jnp.where(msk == 0, -10000.0, 0.0).astype(jnp.float32)

            # Unrolled head loop: each head is a static lane-slice of the D
            # axis, so no in-kernel reshape/transpose is required.
            for h in range(num_heads):
                lo, hi = h * dk, (h + 1) * dk
                s = jax.lax.dot_general(
                    qt[:, lo:hi], kt[:, lo:hi],
                    dimension_numbers=(((1,), (1,)), ((), ())),
                    preferred_element_type=jnp.float32,
                ) + bias                                       # (tq, tkv) f32

                m_prev = m_scratch[h]                          # (tq, 1)
                m_new = jnp.maximum(m_prev, jnp.max(s, axis=-1, keepdims=True))
                alpha = jnp.exp(m_prev - m_new)
                p = jnp.exp(s - m_new)                         # f32 (v5e-safe)
                l_scratch[h] = alpha * l_scratch[h] + jnp.sum(p, axis=-1,
                                                              keepdims=True)
                m_scratch[h] = m_new

                pv = jax.lax.dot_general(
                    p.astype(jnp.bfloat16), vt[:, lo:hi],      # bf16 MXU
                    dimension_numbers=(((1,), (0,)), ((), ())),
                    preferred_element_type=jnp.float32,
                )                                              # (tq, dk) f32
                acc_scratch[:, lo:hi] = alpha * acc_scratch[:, lo:hi] + pv

        @pl.when(ki == pl.num_programs(2) - 1)
        def _():
            inv_l = pl.reciprocal(l_scratch[...], approx=True)  # (H, tq, 1)
            for h in range(num_heads):
                lo, hi = h * dk, (h + 1) * dk
                acc_scratch[:, lo:hi] = acc_scratch[:, lo:hi] * inv_l[h]
            # Single lane-dense (tq, D) store; no concatenate.
            o_ref[0] = acc_scratch[...].astype(o_ref.dtype)

        # TODO(synk): dropout on attention probabilities is identity in eval
        # mode (p=0 here); stochastic dropout omitted.

    return attention_kernel


def _tile_flags(mask, tq, tkv):
    """Per (b, q-tile, kv-tile) flag: 1 if the tile has any unmasked entry.

    If an entire q-tile row-block has no unmasked entry at all, its tiles are
    kept active so the online softmax never divides by zero (matches the
    reference's '-10000' semantics up to that degenerate case).
    """
    B = mask.shape[0]
    S = mask.shape[-1]
    nq, nk = S // tq, S // tkv
    m = (mask != 0).reshape(B, nq, tq, nk, tkv)
    tile_any = m.any(axis=(2, 4))                              # (B, nq, nk)
    row_has_any = tile_any.any(axis=-1, keepdims=True)         # (B, nq, 1)
    flags = jnp.logical_or(tile_any, jnp.logical_not(row_has_any))
    return flags.reshape(-1).astype(jnp.int32)


def pallas_attention(qp, kp, vp, mask, num_heads):
    B, S, D = qp.shape
    dk = D // num_heads
    # 128x128 tiles keep the per-head f32 s/p tile at 16 vregs (no spills);
    # fall back to the full extent for small problems.
    tq = _pick_tile(S, (128,))
    tkv = _pick_tile(S, (128,))
    nq, nk = S // tq, S // tkv
    scale = 1.0 / math.sqrt(dk)

    # TODO(synk): mask=None path (no masking) not implemented; kernel expects
    # an explicit [B, 1, S, S] mask (broadcast over heads) like PyTorch usage.
    flags = _tile_flags(mask, tq, tkv)
    mask_i8 = (mask != 0).astype(jnp.int8)       # 4x less HBM traffic vs int32

    kernel = _make_attention_kernel(num_heads, dk, scale, nq, nk)
    grid = (B, nq, nk)
    return pl.pallas_call(
        kernel,
        out_shape=jax.ShapeDtypeStruct((B, S, D), qp.dtype),
        grid_spec=pltpu.PrefetchScalarGridSpec(
            num_scalar_prefetch=1,
            grid=grid,
            in_specs=[
                pl.BlockSpec((1, tq, D), lambda b, qi, ki, f: (b, qi, 0)),
                pl.BlockSpec((1, tkv, D), lambda b, qi, ki, f: (b, ki, 0)),
                pl.BlockSpec((1, tkv, D), lambda b, qi, ki, f: (b, ki, 0)),
                pl.BlockSpec((1, 1, tq, tkv), lambda b, qi, ki, f: (b, 0, qi, ki)),
            ],
            out_specs=pl.BlockSpec((1, tq, D), lambda b, qi, ki, f: (b, qi, 0)),
            scratch_shapes=[
                pltpu.VMEM((num_heads, tq, 1), jnp.float32),   # running max
                pltpu.VMEM((num_heads, tq, 1), jnp.float32),   # running sum
                pltpu.VMEM((tq, D), jnp.float32),              # output acc
            ],
        ),
        compiler_params=pltpu.CompilerParams(
            dimension_semantics=("parallel", "parallel", "arbitrary")
        ),
    )(flags, qp, kp, vp, mask_i8)


# ---------------------------------------------------------------------------
# MHA forward (matches PyTorch MHA.forward, eval mode)
# ---------------------------------------------------------------------------
def mha_forward(params, q, k, v, mask, num_heads):
    B, S, D = q.shape
    cdt = jnp.bfloat16   # bf16 storage/MXU operands; f32 accumulation in-kernel

    wq = params["wq"].astype(cdt)
    wk = params["wk"].astype(cdt)
    wv = params["wv"].astype(cdt)
    wo = params["wo"].astype(cdt)
    bq, bk, bv, bo = params["bq"], params["bk"], params["bv"], params["bo"]

    if (q is k) and (k is v):
        # Self-attention: fused QKV projection, x read from HBM once.
        x2d = q.reshape(B * S, D).astype(cdt)
        qp2, kp2, vp2 = pallas_qkv_linear(x2d, wq, wk, wv, bq, bk, bv, cdt)
        qprime = qp2.reshape(B, S, D)
        kprime = kp2.reshape(B, S, D)
        vprime = vp2.reshape(B, S, D)
    else:
        qprime = pallas_linear(q.reshape(B * S, D).astype(cdt), wq, bq, cdt
                               ).reshape(B, S, D)
        kprime = pallas_linear(k.reshape(B * S, D).astype(cdt), wk, bk, cdt
                               ).reshape(B, S, D)
        vprime = pallas_linear(v.reshape(B * S, D).astype(cdt), wv, bv, cdt
                               ).reshape(B, S, D)

    x = pallas_attention(qprime, kprime, vprime, mask, num_heads)
    out = pallas_linear(x.reshape(B * S, D), wo, bo, jnp.float32)
    return out.reshape(B, S, D)


# ---------------------------------------------------------------------------
# Pure-JAX reference (for correctness check)
# ---------------------------------------------------------------------------
def mha_reference(params, q, k, v, mask, num_heads):
    B, S, D = q.shape
    dk = D // num_heads
    hp = jax.lax.Precision.HIGHEST

    def lin(x, w, b):
        return jnp.einsum("bsd,nd->bsn", x, w, precision=hp) + b

    def split(x):
        return x.reshape(B, S, num_heads, dk).transpose(0, 2, 1, 3)

    qp = split(lin(q, params["wq"], params["bq"]))
    kp = split(lin(k, params["wk"], params["bk"]))
    vp = split(lin(v, params["wv"], params["bv"]))
    s = jnp.einsum("bhqd,bhkd->bhqk", qp, kp, precision=hp) / math.sqrt(dk)
    s = jnp.where(mask == 0, jnp.float32(-10000.0), s)
    p = jax.nn.softmax(s, axis=-1)
    x = jnp.einsum("bhqk,bhkd->bhqd", p, vp, precision=hp)
    x = x.transpose(0, 2, 1, 3).reshape(B, S, D)
    return jnp.einsum("bsd,nd->bsn", x, params["wo"], precision=hp) + params["bo"]


# ---------------------------------------------------------------------------
# Deterministic parameter init (nn.Linear-style uniform bounds, fixed seed)
# ---------------------------------------------------------------------------
def init_params(key, d_model):
    bound = 1.0 / math.sqrt(d_model)
    keys = jax.random.split(key, 8)
    names = ["wq", "wk", "wv", "wo"]
    params = {}
    for i, n in enumerate(names):
        params[n] = jax.random.uniform(
            keys[2 * i], (d_model, d_model), jnp.float32, -bound, bound
        )
        params["b" + n[1]] = jax.random.uniform(
            keys[2 * i + 1], (d_model,), jnp.float32, -bound, bound
        )
    return params


if __name__ == "__main__":
    B, S, D, H = 2, 8, 32, 4  # batch, seq, d_model, heads (dk = 8)
    key = jax.random.PRNGKey(0)
    kx, kq, kk, kv, kp = jax.random.split(key, 5)

    params = init_params(kp, D)
    # causal mask, broadcast over heads: [B, 1, S, S]; mask==0 -> masked out
    mask = jnp.broadcast_to(
        jnp.tril(jnp.ones((S, S), jnp.int32))[None, None], (B, 1, S, S)
    )

    # 1) Self-attention (exercises the fused QKV projection path).
    x = jax.random.normal(kx, (B, S, D), jnp.float32)
    out = mha_forward(params, x, x, x, mask, H)
    jax.block_until_ready(out)
    assert out.shape == (B, S, D)
    ref = mha_reference(params, x, x, x, mask, H)
    assert jnp.allclose(out, ref, atol=2e-2, rtol=2e-2)

    # 2) Distinct q/k/v (exercises the separate-projection path).
    q = jax.random.normal(kq, (B, S, D), jnp.float32)
    k = jax.random.normal(kk, (B, S, D), jnp.float32)
    v = jax.random.normal(kv, (B, S, D), jnp.float32)
    out2 = mha_forward(params, q, k, v, mask, H)
    jax.block_until_ready(out2)
    ref2 = mha_reference(params, q, k, v, mask, H)
    assert jnp.allclose(out2, ref2, atol=2e-2, rtol=2e-2)

    print("KERNEL_OK")
</pallas_src>

<mosaic_0001>
module attributes {stable_mosaic.version = 11 : i64} {
  func.func @qkv_linear_kernel(%arg0: i32, %arg1: i32, %arg2: i32, %arg3: memref<16x32xbf16, #tpu.memory_space<vmem>>, %arg4: memref<32x32xbf16, #tpu.memory_space<vmem>>, %arg5: memref<32x32xbf16, #tpu.memory_space<vmem>>, %arg6: memref<32x32xbf16, #tpu.memory_space<vmem>>, %arg7: memref<1x32xf32, #tpu.memory_space<vmem>>, %arg8: memref<1x32xf32, #tpu.memory_space<vmem>>, %arg9: memref<1x32xf32, #tpu.memory_space<vmem>>, %arg10: memref<16x32xbf16, #tpu.memory_space<vmem>>, %arg11: memref<16x32xbf16, #tpu.memory_space<vmem>>, %arg12: memref<16x32xbf16, #tpu.memory_space<vmem>>, %arg13: memref<16x32xf32, #tpu.memory_space<vmem>>, %arg14: memref<16x32xf32, #tpu.memory_space<vmem>>, %arg15: memref<16x32xf32, #tpu.memory_space<vmem>>) attributes {dimension_semantics = [#tpu.dimension_semantics<parallel>, #tpu.dimension_semantics<parallel>, #tpu.dimension_semantics<arbitrary>], iteration_bounds = array<i64: 1, 1, 1>, scalar_prefetch = 0 : i64, scratch_operands = 3 : i64, tpu.core_type = #tpu.core_type<tc>, window_params = [{transform_indices = @transform_0, window_bounds = array<i64: 16, 32>}, {transform_indices = @transform_1, window_bounds = array<i64: 32, 32>}, {transform_indices = @transform_2, window_bounds = array<i64: 32, 32>}, {transform_indices = @transform_3, window_bounds = array<i64: 32, 32>}, {transform_indices = @transform_4, window_bounds = array<i64: 1, 32>}, {transform_indices = @transform_5, window_bounds = array<i64: 1, 32>}, {transform_indices = @transform_6, window_bounds = array<i64: 1, 32>}, {transform_indices = @transform_7, window_bounds = array<i64: 16, 32>}, {transform_indices = @transform_8, window_bounds = array<i64: 16, 32>}, {transform_indices = @transform_9, window_bounds = array<i64: 16, 32>}]} {
    %c0_i32 = arith.constant 0 : i32
    %0 = arith.cmpi eq, %arg2, %c0_i32 : i32
    %1 = arith.extui %0 : i1 to i32
    %c0_i32_0 = arith.constant 0 : i32
    %2 = arith.cmpi ne, %1, %c0_i32_0 : i32
    scf.if %2 {
      %cst_24 = arith.constant 0.000000e+00 : f32
      %22 = vector.broadcast %cst_24 : f32 to vector<16x32xf32>
      %c0_25 = arith.constant 0 : index
      %c0_26 = arith.constant 0 : index
      %23 = vector.load %arg13[%c0_25, %c0_26] : memref<16x32xf32, #tpu.memory_space<vmem>>, vector<16x32xf32>
      tpu.vector_store %arg13[%c0_25, %c0_26], %22 {strides = array<i32>} : memref<16x32xf32, #tpu.memory_space<vmem>>, vector<16x32xf32>,
      %cst_27 = arith.constant 0.000000e+00 : f32
      %24 = vector.broadcast %cst_27 : f32 to vector<16x32xf32>
      %c0_28 = arith.constant 0 : index
      %c0_29 = arith.constant 0 : index
      %25 = vector.load %arg14[%c0_28, %c0_29] : memref<16x32xf32, #tpu.memory_space<vmem>>, vector<16x32xf32>
      tpu.vector_store %arg14[%c0_28, %c0_29], %24 {strides = array<i32>} : memref<16x32xf32, #tpu.memory_space<vmem>>, vector<16x32xf32>,
      %cst_30 = arith.constant 0.000000e+00 : f32
      %26 = vector.broadcast %cst_30 : f32 to vector<16x32xf32>
      %c0_31 = arith.constant 0 : index
      %c0_32 = arith.constant 0 : index
      %27 = vector.load %arg15[%c0_31, %c0_32] : memref<16x32xf32, #tpu.memory_space<vmem>>, vector<16x32xf32>
      tpu.vector_store %arg15[%c0_31, %c0_32], %26 {strides = array<i32>} : memref<16x32xf32, #tpu.memory_space<vmem>>, vector<16x32xf32>,
    } else {
    }
    %c0 = arith.constant 0 : index
    %c0_1 = arith.constant 0 : index
    %3 = vector.load %arg3[%c0, %c0_1] : memref<16x32xbf16, #tpu.memory_space<vmem>>, vector<16x32xbf16>
    %c0_2 = arith.constant 0 : index
    %c0_3 = arith.constant 0 : index
    %4 = vector.load %arg13[%c0_2, %c0_3] : memref<16x32xf32, #tpu.memory_space<vmem>>, vector<16x32xf32>
    %c0_4 = arith.constant 0 : index
    %c0_5 = arith.constant 0 : index
    %5 = vector.load %arg4[%c0_4, %c0_5] : memref<32x32xbf16, #tpu.memory_space<vmem>>, vector<32x32xbf16>
    %cst = arith.constant dense<0.000000e+00> : vector<16x32xf32>
    %6 = tpu.matmul %3, %5, %cst {dimension_numbers = #tpu.dot_dimension_numbers<[1], [1], [0], [0], [0, 0, 1, 0], [], []>} : vector<16x32xbf16>, vector<32x32xbf16>, vector<16x32xf32> -> vector<16x32xf32>
    %7 = arith.addf %4, %6 : vector<16x32xf32>
    %c0_6 = arith.constant 0 : index
    %c0_7 = arith.constant 0 : index
    %8 = vector.load %arg13[%c0_6, %c0_7] : memref<16x32xf32, #tpu.memory_space<vmem>>, vector<16x32xf32>
    tpu.vector_store %arg13[%c0_6, %c0_7], %7 {strides = array<i32>} : memref<16x32xf32, #tpu.memory_space<vmem>>, vector<16x32xf32>,
    %c0_8 = arith.constant 0 : index
    %c0_9 = arith.constant 0 : index
    %9 = vector.load %arg14[%c0_8, %c0_9] : memref<16x32xf32, #tpu.memory_space<vmem>>, vector<16x32xf32>
    %c0_10 = arith.constant 0 : index
    %c0_11 = arith.constant 0 : index
    %10 = vector.load %arg5[%c0_10, %c0_11] : memref<32x32xbf16, #tpu.memory_space<vmem>>, vector<32x32xbf16>
    %cst_12 = arith.constant dense<0.000000e+00> : vector<16x32xf32>
    %11 = tpu.matmul %3, %10, %cst_12 {dimension_numbers = #tpu.dot_dimension_numbers<[1], [1], [0], [0], [0, 0, 1, 0], [], []>} : vector<16x32xbf16>, vector<32x32xbf16>, vector<16x32xf32> -> vector<16x32xf32>
    %12 = arith.addf %9, %11 : vector<16x32xf32>
    %c0_13 = arith.constant 0 : index
    %c0_14 = arith.constant 0 : index
    %13 = vector.load %arg14[%c0_13, %c0_14] : memref<16x32xf32, #tpu.memory_space<vmem>>, vector<16x32xf32>
    tpu.vector_store %arg14[%c0_13, %c0_14], %12 {strides = array<i32>} : memref<16x32xf32, #tpu.memory_space<vmem>>, vector<16x32xf32>,
    %c0_15 = arith.constant 0 : index
    %c0_16 = arith.constant 0 : index
    %14 = vector.load %arg15[%c0_15, %c0_16] : memref<16x32xf32, #tpu.memory_space<vmem>>, vector<16x32xf32>
    %c0_17 = arith.constant 0 : index
    %c0_18 = arith.constant 0 : index
    %15 = vector.load %arg6[%c0_17, %c0_18] : memref<32x32xbf16, #tpu.memory_space<vmem>>, vector<32x32xbf16>
    %cst_19 = arith.constant dense<0.000000e+00> : vector<16x32xf32>
    %16 = tpu.matmul %3, %15, %cst_19 {dimension_numbers = #tpu.dot_dimension_numbers<[1], [1], [0], [0], [0, 0, 1, 0], [], []>} : vector<16x32xbf16>, vector<32x32xbf16>, vector<16x32xf32> -> vector<16x32xf32>
    %17 = arith.addf %14, %16 : vector<16x32xf32>
    %c0_20 = arith.constant 0 : index
    %c0_21 = arith.constant 0 : index
    %18 = vector.load %arg15[%c0_20, %c0_21] : memref<16x32xf32, #tpu.memory_space<vmem>>, vector<16x32xf32>
    tpu.vector_store %arg15[%c0_20, %c0_21], %17 {strides = array<i32>} : memref<16x32xf32, #tpu.memory_space<vmem>>, vector<16x32xf32>,
    %c0_i32_22 = arith.constant 0 : i32
    %19 = arith.cmpi eq, %arg2, %c0_i32_22 : i32
    %20 = arith.extui %19 : i1 to i32
    %c0_i32_23 = arith.constant 0 : i32
    %21 = arith.cmpi ne, %20, %c0_i32_23 : i32
    scf.if %21 {
      %c0_24 = arith.constant 0 : index
      %c0_25 = arith.constant 0 : index
      %22 = vector.load %arg13[%c0_24, %c0_25] : memref<16x32xf32, #tpu.memory_space<vmem>>, vector<16x32xf32>
      %c0_26 = arith.constant 0 : index
      %c0_27 = arith.constant 0 : index
      %23 = vector.load %arg7[%c0_26, %c0_27] : memref<1x32xf32, #tpu.memory_space<vmem>>, vector<1x32xf32>
      %24 = vector.broadcast %23 : vector<1x32xf32> to vector<16x32xf32>
      %25 = arith.addf %22, %24 : vector<16x32xf32>
      %26 = arith.truncf %25 : vector<16x32xf32> to vector<16x32xbf16>
      %c0_28 = arith.constant 0 : index
      %c0_29 = arith.constant 0 : index
      %27 = vector.load %arg10[%c0_28, %c0_29] : memref<16x32xbf16, #tpu.memory_space<vmem>>, vector<16x32xbf16>
      tpu.vector_store %arg10[%c0_28, %c0_29], %26 {strides = array<i32>} : memref<16x32xbf16, #tpu.memory_space<vmem>>, vector<16x32xbf16>,
      %c0_30 = arith.constant 0 : index
      %c0_31 = arith.constant 0 : index
      %28 = vector.load %arg14[%c0_30, %c0_31] : memref<16x32xf32, #tpu.memory_space<vmem>>, vector<16x32xf32>
      %c0_32 = arith.constant 0 : index
      %c0_33 = arith.constant 0 : index
      %29 = vector.load %arg8[%c0_32, %c0_33] : memref<1x32xf32, #tpu.memory_space<vmem>>, vector<1x32xf32>
      %30 = vector.broadcast %29 : vector<1x32xf32> to vector<16x32xf32>
      %31 = arith.addf %28, %30 : vector<16x32xf32>
      %32 = arith.truncf %31 : vector<16x32xf32> to vector<16x32xbf16>
      %c0_34 = arith.constant 0 : index
      %c0_35 = arith.constant 0 : index
      %33 = vector.load %arg11[%c0_34, %c0_35] : memref<16x32xbf16, #tpu.memory_space<vmem>>, vector<16x32xbf16>
      tpu.vector_store %arg11[%c0_34, %c0_35], %32 {strides = array<i32>} : memref<16x32xbf16, #tpu.memory_space<vmem>>, vector<16x32xbf16>,
      %c0_36 = arith.constant 0 : index
      %c0_37 = arith.constant 0 : index
      %34 = vector.load %arg15[%c0_36, %c0_37] : memref<16x32xf32, #tpu.memory_space<vmem>>, vector<16x32xf32>
      %c0_38 = arith.constant 0 : index
      %c0_39 = arith.constant 0 : index
      %35 = vector.load %arg9[%c0_38, %c0_39] : memref<1x32xf32, #tpu.memory_space<vmem>>, vector<1x32xf32>
      %36 = vector.broadcast %35 : vector<1x32xf32> to vector<16x32xf32>
      %37 = arith.addf %34, %36 : vector<16x32xf32>
      %38 = arith.truncf %37 : vector<16x32xf32> to vector<16x32xbf16>
      %c0_40 = arith.constant 0 : index
      %c0_41 = arith.constant 0 : index
      %39 = vector.load %arg12[%c0_40, %c0_41] : memref<16x32xbf16, #tpu.memory_space<vmem>>, vector<16x32xbf16>
      tpu.vector_store %arg12[%c0_40, %c0_41], %38 {strides = array<i32>} : memref<16x32xbf16, #tpu.memory_space<vmem>>, vector<16x32xbf16>,
    } else {
    }
    return
  }
  func.func @transform_0(%arg0: i32, %arg1: i32, %arg2: i32) -> (i32, i32) {
    %c0_i32 = arith.constant 0 : i32
    return %arg0, %arg2 : i32, i32
  }
  func.func @transform_1(%arg0: i32, %arg1: i32, %arg2: i32) -> (i32, i32) {
    %c0_i32 = arith.constant 0 : i32
    return %arg1, %arg2 : i32, i32
  }
  func.func @transform_2(%arg0: i32, %arg1: i32, %arg2: i32) -> (i32, i32) {
    %c0_i32 = arith.constant 0 : i32
    return %arg1, %arg2 : i32, i32
  }
  func.func @transform_3(%arg0: i32, %arg1: i32, %arg2: i32) -> (i32, i32) {
    %c0_i32 = arith.constant 0 : i32
    return %arg1, %arg2 : i32, i32
  }
  func.func @transform_4(%arg0: i32, %arg1: i32, %arg2: i32) -> (i32, i32) {
    %c0_i32 = arith.constant 0 : i32
    %c0_i32_0 = arith.constant 0 : i32
    return %c0_i32, %arg1 : i32, i32
  }
  func.func @transform_5(%arg0: i32, %arg1: i32, %arg2: i32) -> (i32, i32) {
    %c0_i32 = arith.constant 0 : i32
    %c0_i32_0 = arith.constant 0 : i32
    return %c0_i32, %arg1 : i32, i32
  }
  func.func @transform_6(%arg0: i32, %arg1: i32, %arg2: i32) -> (i32, i32) {
    %c0_i32 = arith.constant 0 : i32
    %c0_i32_0 = arith.constant 0 : i32
    return %c0_i32, %arg1 : i32, i32
  }
  func.func @transform_7(%arg0: i32, %arg1: i32, %arg2: i32) -> (i32, i32) {
    %c0_i32 = arith.constant 0 : i32
    return %arg0, %arg1 : i32, i32
  }
  func.func @transform_8(%arg0: i32, %arg1: i32, %arg2: i32) -> (i32, i32) {
    %c0_i32 = arith.constant 0 : i32
    return %arg0, %arg1 : i32, i32
  }
  func.func @transform_9(%arg0: i32, %arg1: i32, %arg2: i32) -> (i32, i32) {
    %c0_i32 = arith.constant 0 : i32
    return %arg0, %arg1 : i32, i32
  }
}

</mosaic_0001>

<bundles_post_ra>
// kernel: tpu_custom_call.1
= control target key start
LH: loop header
LB: loop body
LE: loop exit
PB: predicated region body
PF: predicated region fallthrough
CT: control target
= control target key end

     0   :  { %15 = vsyncpa [#allocation6], 0  ;;  %s700_s0 = inlined_call_operand.hbm [shape: bf16[16,32], index: 0, kind: input, shape index: {}]   ;;  %s701_s1 = inlined_call_operand.hbm [shape: bf16[32,32], index: 1, kind: input, shape index: {}]   ;;  %s702_s2 = inlined_call_operand.hbm [shape: bf16[32,32], index: 2, kind: input, shape index: {}]   ;;  %s703_s3 = inlined_call_operand.hbm [shape: bf16[32,32], index: 3, kind: input, shape index: {}]   ;;  %s704_s4 = inlined_call_operand.vmem [shape: f32[1,32], index: 4, kind: input, shape index: {}]   ;;  %s705_s5 = inlined_call_operand.vmem [shape: f32[1,32], index: 5, kind: input, shape index: {}]   ;;  %s706_s6 = inlined_call_operand.vmem [shape: f32[1,32], index: 6, kind: input, shape index: {}]   ;;  %s707_s7 = inlined_call_operand.hbm [shape: bf16[16,32], index: 7, kind: output, shape index: {0}]   ;;  %s708_s8 = inlined_call_operand.hbm [shape: bf16[16,32], index: 8, kind: output, shape index: {1}]   ;;  %s709_s9 = inlined_call_operand.hbm [shape: bf16[16,32], index: 9, kind: output, shape index: {2}]  }
   0x1   :  { %16 = vsyncpa [#allocation9], 0 }
   0x2   :  { %17 = vsyncpa [#allocation12], 0 }
   0x3   :  { %18 = vsyncpa [#allocation7], 0 }
   0x4   :  { %19 = vsyncpa [#allocation15], 0  ;;  %s37_s11 = sshll.u32 %s701_s1, 4  ;;  %s562_s12 = smov [#allocation8]   ;;  %s38_s11 = int_to_ptr.hbm [resolvable:$true] %s37_s11 }
   0x5   :  { %s39_s13 = sshll.u32 %s562_s12, 4  ;;  %s24_s16 = sshll.u32 %s700_s0, 4  ;;  %s40_s13 = int_to_ptr.vmem [resolvable:$true] %s39_s13  ;;  %s25_s16 = int_to_ptr.hbm [resolvable:$true] %s24_s16 }
   0x6   :  { %s563_s17 = smov 64   ;;  %s564_s18 = smov 4  }
   0x7   :  { %45 = dma.hbm_to_vmem [thread:$0]  %s38_s11, 256, %s40_s13, [#allocation9], %s563_s17, %s563_s17, %s564_s18  }
   0x8   :  { %s565_s19 = smov [#allocation5]   ;;  %s50_s1 = sshll.u32 %s702_s2, 4  ;;  %s51_s1 = int_to_ptr.hbm [resolvable:$true] %s50_s1 }
   0x9   :  { %s26_s20 = sshll.u32 %s565_s19, 4  ;;  %s63_s24 = sshll.u32 %s703_s3, 4  ;;  %s27_s20 = int_to_ptr.vmem [resolvable:$true] %s26_s20  ;;  %s64_s24 = int_to_ptr.hbm [resolvable:$true] %s63_s24 }
   0xa   :  { %32 = dma.hbm_to_vmem [thread:$0]  %s25_s16, 128, %s27_s20, [#allocation6], %s563_s17, %s563_s17, %s564_s18  }
   0xb   :  { %s566_s25 = smov [#allocation10]   ;;  %s567_s27 = smov [#allocation11]  }
   0xc   :  { %s52_s26 = sshll.u32 %s566_s25, 4  ;;  %s65_s2 = sshll.u32 %s567_s27, 4  ;;  %s53_s26 = int_to_ptr.vmem [resolvable:$true] %s52_s26  ;;  %s66_s2 = int_to_ptr.vmem [resolvable:$true] %s65_s2 }
   0xd   :  { %58 = dma.hbm_to_vmem [thread:$0]  %s51_s1, 256, %s53_s26, [#allocation9], %s563_s17, %s563_s17, %s564_s18  }
   0xe   :  { %71 = dma.hbm_to_vmem [thread:$0]  %s64_s24, 256, %s66_s2, [#allocation12], %s563_s17, %s563_s17, %s564_s18  }
   0xf   :  { %552 = dma.done.wait [#allocation6], 128  }
  0x10   :  { %553 = vsyncadd [#allocation6], 4294967168 }
  0x11   :  { %554 = dma.done.wait [#allocation9], 512  }
  0x12   :  { %555 = vsyncadd [#allocation9], 4294966784 }
  0x13   :  { %556 = dma.done.wait [#allocation12], 256  }
  0x14   :  { %557 = vsyncadd [#allocation12], 4294967040  ;;  %vm99_vm0 = vcmask 261120   ;;  %v568_v0 = vmov 0.0   ;;  %v366_v1 = vld [vmem:[#allocation8 + $0x8] sm:$0xff]  ;;  %v368_v2 = vld [vmem:[#allocation10 + $0x8] sm:$0xff] }
  0x15   :  { %100 = vst.msk [vmem:[#allocation2] sm:$0xff] %vm99_vm0, %v568_v0  ;;  %v370_v3 = vld [vmem:[#allocation11 + $0x8] sm:$0xff]  ;;  %v137_v4 = vsel %vm99_vm0, %v366_v1, 0  ;;  %v177_v5 = vsel %vm99_vm0, %v368_v2, 0  ;;  %v365_v7 = vld [vmem:[#allocation8] sm:$0xff]  ;;  %v367_v8 = vld [vmem:[#allocation10] sm:$0xff] }
  0x16   :  { %101 = vst.msk [vmem:[#allocation2 + $0x8] sm:$0xff] %vm99_vm0, %v568_v0  ;;  %v217_v6 = vsel %vm99_vm0, %v370_v3, 0  ;;  %145 = vmatpush.bf16.xpose.msra.mxu0 %v137_v4  ;;  %185 = vmatpush.bf16.xpose.msra.mxu1 %v177_v5  ;;  %v369_v9 = vld [vmem:[#allocation11] sm:$0xff]  ;;  %v134_v10 = vsel %vm99_vm0, %v365_v7, 0  ;;  %v174_v11 = vsel %vm99_vm0, %v367_v8, 0  ;;  %v364_v13 = vld [vmem:[#allocation5] sm:$0xff] }
  0x17   :  { %102 = vst.msk [vmem:[#allocation3] sm:$0xff] %vm99_vm0, %v568_v0  ;;  %225 = vmatpush.bf16.xpose.msra.mxu2 %v217_v6  ;;  %v214_v12 = vsel %vm99_vm0, %v369_v9, 0  ;;  %v382_v24 = vld [vmem:[%s704_s4] ss:$0 sm:$0xff]  ;;  %vm250_vm1 = vcmask 257024   ;;  %s283_s14 = sshll.u32 %s707_s7, 4  ;;  %s284_s14 = int_to_ptr.hbm [resolvable:$true] %s283_s14 }
  0x18   :  { %103 = vst.msk [vmem:[#allocation3 + $0x8] sm:$0xff] %vm99_vm0, %v568_v0  ;;  %v381_v28 = vld [vmem:[%s705_s5] ss:$0 sm:$0xff]  ;;  %s569_s5 = smov [#allocation13]   ;;  %s570_s15 = smov [#allocation14]  }
  0x19   :  { %104 = vst.msk [vmem:[#allocation4] sm:$0xff] %vm99_vm0, %v568_v0  ;;  %v383_v38 = vld [vmem:[%s706_s6] ss:$0 sm:$0xff]  ;;  %s281_s11 = sshll.u32 %s569_s5, 4  ;;  %s294_s6 = sshll.u32 %s570_s15, 4  ;;  %s282_s11 = int_to_ptr.vmem [resolvable:$true] %s281_s11  ;;  %s295_s6 = int_to_ptr.vmem [resolvable:$true] %s294_s6 }
  0x1a   :  { %105 = vst.msk [vmem:[#allocation4 + $0x8] sm:$0xff] %vm99_vm0, %v568_v0  ;;  %s296_s20 = sshll.u32 %s708_s8, 4  ;;  %s571_s7 = smov [#allocation16]   ;;  %s297_s20 = int_to_ptr.hbm [resolvable:$true] %s296_s20 }
  0x1b   :  { %s307_s21 = sshll.u32 %s571_s7, 4  ;;  %s309_s0 = sshll.u32 %s709_s9, 4  ;;  %s308_s21 = int_to_ptr.vmem [resolvable:$true] %s307_s21  ;;  %s310_s0 = int_to_ptr.hbm [resolvable:$true] %s309_s0 }
  0x1c   :  { %v108_v14 = vld [vmem:[#allocation2] sm:$0xff] }
  0x1d   :  { %v109_v21 = vld [vmem:[#allocation2 + $0x8] sm:$0xff] }
  0x1e   :  { %146 = vmatpush.bf16.xpose.msra.mxu0 %v134_v10  ;;  %186 = vmatpush.bf16.xpose.msra.mxu1 %v174_v11  ;;  %v157_v15 = vld [vmem:[#allocation3] sm:$0xff] }
  0x1f   :  { %226 = vmatpush.bf16.xpose.msra.mxu2 %v214_v12  ;;  %v158_v22 = vld [vmem:[#allocation3 + $0x8] sm:$0xff] }
  0x20   :  { %v197_v20 = vld [vmem:[#allocation4] sm:$0xff] }
  0x21   :  { %v198_v35 = vld [vmem:[#allocation4 + $0x8] sm:$0xff] }
  0x25   :  { %345 = vmatmul.msk.bf16.vlgmr.msra.gmra.mxu0 %vm99_vm0, %v364_v13  ;;  %354 = vmatmul.msk.bf16.vlgmr.msra.gmra.mxu1 %vm99_vm0, %v364_v13 }
  0x26   :  { %363 = vmatmul.msk.bf16.vlgmr.msra.gmra.mxu2 %vm99_vm0, %v364_v13 }
  0xa2   :  { %v148_v16 = vpop.f32.mrf.mxu0  ;;  %v188_v17 = vpop.f32.mrf.mxu1 }
  0xa3   :  { %v153_v18 = vadd.f32 %v148_v16, %v108_v14  ;;  %v193_v19 = vadd.f32 %v188_v17, %v157_v15 }
  0xa5   :  { %155 = vst.msk [vmem:[#allocation2] sm:$0xff] %vm99_vm0, %v153_v18 }
  0xa6   :  { %195 = vst.msk [vmem:[#allocation3] sm:$0xff] %vm99_vm0, %v193_v19 }
  0xa9   :  { %v228_v23 = vpop.f32.mrf.mxu2 }
  0xaa   :  { %v233_v25 = vadd.f32 %v228_v23, %v197_v20  ;;  %v150_v26 = vpop.f32.mrf.mxu0  ;;  %v190_v27 = vpop.f32.mrf.mxu1 }
  0xab   :  { %v154_v29 = vadd.f32 %v150_v26, %v109_v21  ;;  %v194_v30 = vadd.f32 %v190_v27, %v158_v22 }
  0xac   :  { %235 = vst.msk [vmem:[#allocation4] sm:$0xff] %vm99_vm0, %v233_v25  ;;  %v240_v31 = vld [vmem:[#allocation2] sm:$0xff] }
  0xad   :  { %156 = vst.msk [vmem:[#allocation2 + $0x8] sm:$0xff] %vm99_vm0, %v154_v29  ;;  %v253_v32 = vld [vmem:[#allocation3] sm:$0xff]  ;;  %v246_v33 = vadd.f32 %v382_v24, %v240_v31 }
  0xae   :  { %196 = vst.msk [vmem:[#allocation3 + $0x8] sm:$0xff] %vm99_vm0, %v194_v30  ;;  %v259_v34 = vadd.f32 %v381_v28, %v253_v32 }
  0xaf   :  { %v248_v36 = vpack.c.bf16 %v246_v33, %v246_v33 }
  0xb0   :  { %v261_v37 = vpack.c.bf16 %v259_v34, %v259_v34 }
  0xb1   :  { %v230_v39 = vpop.f32.mrf.mxu2  ;;  %251 = vst.msk [vmem:[#allocation13] sm:$0xf] %vm250_vm1, %v248_v36 }
  0xb2   :  { %v234_v40 = vadd.f32 %v230_v39, %v198_v35  ;;  %263 = vst.msk [vmem:[#allocation14] sm:$0xf] %vm250_vm1, %v261_v37 }
  0xb3   :  { %v265_v41 = vld [vmem:[#allocation4] sm:$0xff] }
  0xb4   :  { %236 = vst.msk [vmem:[#allocation4 + $0x8] sm:$0xff] %vm99_vm0, %v234_v40  ;;  %v241_v42 = vld [vmem:[#allocation2 + $0x8] sm:$0xff]  ;;  %v271_v43 = vadd.f32 %v383_v38, %v265_v41 }
  0xb5   :  { %v254_v44 = vld [vmem:[#allocation3 + $0x8] sm:$0xff]  ;;  %v247_v45 = vadd.f32 %v382_v24, %v241_v42 }
  0xb6   :  { %v260_v46 = vadd.f32 %v381_v28, %v254_v44  ;;  %v273_v47 = vpack.c.bf16 %v271_v43, %v271_v43 }
  0xb7   :  { %v249_v48 = vpack.c.bf16 %v247_v45, %v247_v45 }
  0xb8   :  { %v262_v49 = vpack.c.bf16 %v260_v46, %v260_v46  ;;  %275 = vst.msk [vmem:[#allocation16] sm:$0xf] %vm250_vm1, %v273_v47 }
  0xb9   :  { %252 = vst.msk [vmem:[#allocation13 + $0x4] sm:$0xf] %vm250_vm1, %v249_v48 }
  0xba   :  { %264 = vst.msk [vmem:[#allocation14 + $0x4] sm:$0xf] %vm250_vm1, %v262_v49  ;;  %289 = dma.vmem_to_hbm [thread:$0]  %s282_s11, 128, %s284_s14, [#allocation7], %s563_s17, %s563_s17, %s564_s18  }
  0xbb   :  { %302 = dma.vmem_to_hbm [thread:$0]  %s295_s6, 128, %s297_s20, [#allocation15], %s563_s17, %s563_s17, %s564_s18   ;;  %v266_v50 = vld [vmem:[#allocation4 + $0x8] sm:$0xff] }
  0xbc   :  { %v272_v51 = vadd.f32 %v383_v38, %v266_v50 }
  0xbe   :  { %v274_v52 = vpack.c.bf16 %v272_v51, %v272_v51 }
  0xc0   :  { %276 = vst.msk [vmem:[#allocation16 + $0x4] sm:$0xf] %vm250_vm1, %v274_v52 }
  0xc1   :  { %315 = dma.vmem_to_hbm [thread:$0]  %s308_s21, 128, %s310_s0, [#allocation15], %s563_s17, %s563_s17, %s564_s18  }
  0xc2   :  { %558 = dma.done.wait [#allocation7], 128  }
  0xc3   :  { %559 = vsyncadd [#allocation7], 4294967168 }
  0xc4   :  { %560 = dma.done.wait [#allocation15], 256  }
  0xc5   :  { %561 = vsyncadd [#allocation15], 4294967040 }
  0xc6   :  { %328 = vsyncpa [#allocation6], 1 }
  0xc7   :  { %329 = vsyncpa [#allocation9], 1 }
  0xc8   :  { %330 = vsyncpa [#allocation12], 1 }
  0xc9   :  { %331 = vsyncpa [#allocation7], 1 }
  0xca   :  { %332 = vsyncpa [#allocation15], 1 }

</bundles_post_ra>
